<compile_context>
chip_gen: v5e
topology: v5e:2x2
jax: 0.10.0
libtpu: 0.0.40
codegen_flags: <defaults>
</compile_context>

<pallas_src>
import math

import jax
import jax.numpy as jnp
import numpy as np
from jax import lax
from jax.experimental import pallas as pl
from jax.experimental.pallas import tpu as pltpu


def make_attention_pool_kernel(T0, C, num_heads, C_out):
    ch = C // num_heads
    inv_sqrt_ch = 1.0 / math.sqrt(ch)      # == scale**2 in the PyTorch module
    inv_T0 = 1.0 / T0

    def mdot(a, b):
        # bf16 MXU operands, f32 accumulation (weights arrive already in bf16).
        return jnp.dot(a.astype(jnp.bfloat16), b.astype(jnp.bfloat16),
                       preferred_element_type=jnp.float32)

    def kernel(x_ref, pos0_ref, posr_ref,
               wq_ref, bq_ref, wk_ref, bk_ref, wv_ref, bv_ref,
               hsel_ref, wc_ref, bc_ref, o_ref):
        x = x_ref[0]                                          # (T0, C) f32

        # token 0 = spatial mean; add positional embedding (f32 elementwise)
        mean = jnp.sum(x, axis=0, keepdims=True) * inv_T0     # (1, C)
        tok0 = mean + pos0_ref[...]                           # (1, C)
        tokr = x + posr_ref[...]                              # (T0, C)

        # qkv_proj: 1x1 conv == channel matmul. Only q at token 0 is needed
        # because the module returns x[:, :, 0]; k, v needed for all tokens.
        q0 = mdot(tok0, wq_ref[...]) + bq_ref[...]            # (1, C)
        k0 = mdot(tok0, wk_ref[...]) + bk_ref[...]            # (1, C)
        v0 = mdot(tok0, wv_ref[...]) + bv_ref[...]            # (1, C)
        kr = mdot(tokr, wk_ref[...]) + bk_ref[...]            # (T0, C)
        vr = mdot(tokr, wv_ref[...]) + bv_ref[...]            # (T0, C)

        # Per-head attention scores for query token 0, done on the MXU with a
        # same-head indicator matrix hsel[c, c'] = 1 iff c, c' in same head.
        # Result is broadcast over each head's channels -> stays (T, C) dense.
        s_r = mdot(kr * q0, hsel_ref[...]) * inv_sqrt_ch      # (T0, C)
        s_0 = mdot(k0 * q0, hsel_ref[...]) * inv_sqrt_ch      # (1, C)

        # softmax over the T0 + 1 tokens (token 0 kept separate, never padded)
        m = jnp.maximum(jnp.max(s_r, axis=0, keepdims=True), s_0)   # (1, C)
        p_r = jnp.exp(s_r - m)                                # (T0, C)
        p_0 = jnp.exp(s_0 - m)                                # (1, C)
        denom = jnp.sum(p_r, axis=0, keepdims=True) + p_0     # (1, C)
        inv = 1.0 / denom

        # attention output at token 0 (per-channel weighted sum of v)
        a0 = (jnp.sum(p_r * vr, axis=0, keepdims=True) + p_0 * v0) * inv  # (1, C)

        # c_proj at token 0 only
        out = mdot(a0, wc_ref[...]) + bc_ref[...]             # (1, C_out)
        o_ref[0] = out.astype(o_ref.dtype)

    return kernel


def attention_pool2d_forward(x_nchw, params, num_head_channels):
    B, C, H, W = x_nchw.shape
    T0 = H * W
    num_heads = C // num_head_channels
    assert num_heads * num_head_channels == C
    C_out = params["w_c"].shape[0]

    # (B, C, H, W) -> (B, T0, C): channels on TPU lanes (lane-dense for C>=128)
    x_t = jnp.transpose(x_nchw.reshape(B, C, T0), (0, 2, 1)).astype(jnp.float32)

    # positional embedding (C, T0+1) -> token-major (T0+1, C)
    pos_t = jnp.transpose(params["pos"]).astype(jnp.float32)
    pos0 = pos_t[0:1]                     # (1, C)  mean-token position
    posr = pos_t[1:]                      # (T0, C)

    # Conv1d(k=1) weights: (out, in) -> transposed (in, out), cast to bf16.
    w_qkv = params["w_qkv"]               # (3C, C)
    b_qkv = params["b_qkv"].astype(jnp.float32)
    to_bf16 = lambda a: a.astype(jnp.bfloat16)
    wq = to_bf16(jnp.transpose(w_qkv[0:C]))
    wk = to_bf16(jnp.transpose(w_qkv[C:2 * C]))
    wv = to_bf16(jnp.transpose(w_qkv[2 * C:3 * C]))
    bq = b_qkv[0:C].reshape(1, C)
    bk = b_qkv[C:2 * C].reshape(1, C)
    bv = b_qkv[2 * C:3 * C].reshape(1, C)
    wc = to_bf16(jnp.transpose(params["w_c"]))            # (C, C_out)
    bc = params["b_c"].reshape(1, C_out).astype(jnp.float32)

    # same-head indicator matrix (C, C): 1 where channels share a head
    gid = np.arange(C) // num_head_channels
    hsel = jnp.asarray((gid[:, None] == gid[None, :]).astype(np.float32),
                       dtype=jnp.bfloat16)

    inputs = (x_t, pos0, posr, wq, bq, wk, bk, wv, bv, hsel, wc, bc)

    def full_spec(arr):
        return pl.BlockSpec(arr.shape, lambda b, _n=arr.ndim: (0,) * _n)

    in_specs = [pl.BlockSpec((1, T0, C), lambda b: (b, 0, 0))]   # x: one batch elem
    in_specs += [full_spec(a) for a in inputs[1:]]               # params: whole array

    out = pl.pallas_call(
        make_attention_pool_kernel(T0, C, num_heads, C_out),
        out_shape=jax.ShapeDtypeStruct((B, 1, C_out), jnp.float32),
        grid=(B,),
        in_specs=in_specs,
        out_specs=pl.BlockSpec((1, 1, C_out), lambda b: (b, 0, 0)),
        compiler_params=pltpu.CompilerParams(
            dimension_semantics=("parallel",)),   # v7x: batch across both TCs
    )(*inputs)

    return out[:, 0, :]                           # (B, C_out)


def attention_pool2d_reference(x, params, num_head_channels):
    """Pure-JAX reference mirroring the PyTorch AttentionPool2d exactly."""
    B, C, H, W = x.shape
    T0 = H * W
    T = T0 + 1
    num_heads = C // num_head_channels
    ch = num_head_channels

    xf = x.reshape(B, C, T0)
    xm = jnp.concatenate([xf.mean(axis=-1, keepdims=True), xf], axis=-1)   # (B, C, T)
    xm = xm + params["pos"][None]
    qkv = (jnp.einsum("oc,bct->bot", params["w_qkv"], xm,
                      precision=lax.Precision.HIGHEST)
           + params["b_qkv"][None, :, None])                              # (B, 3C, T)
    q, k, v = jnp.split(qkv, 3, axis=1)
    scale = 1.0 / math.sqrt(math.sqrt(ch))
    qh = (q * scale).reshape(B * num_heads, ch, T)
    kh = (k * scale).reshape(B * num_heads, ch, T)
    vh = v.reshape(B * num_heads, ch, T)
    w = jnp.einsum("bct,bcs->bts", qh, kh, precision=lax.Precision.HIGHEST)
    w = jax.nn.softmax(w, axis=-1)
    a = jnp.einsum("bts,bcs->bct", w, vh,
                   precision=lax.Precision.HIGHEST).reshape(B, C, T)
    out = (jnp.einsum("oc,bct->bot", params["w_c"], a,
                      precision=lax.Precision.HIGHEST)
           + params["b_c"][None, :, None])
    return out[:, :, 0]


if __name__ == "__main__":
    # embed_dim=128, spacial_dim=8, num_head_channels=32 -> 4 heads,
    # output_dim=None -> C_out = embed_dim. C=128 keeps all tiles lane-dense.
    B, C, Hs, Ws = 2, 128, 8, 8
    num_head_channels = 32
    C_out = C
    T = Hs * Ws + 1

    key = jax.random.PRNGKey(0)
    ks = jax.random.split(key, 6)
    x = jax.random.normal(ks[0], (B, C, Hs, Ws), jnp.float32)
    params = {
        "pos": jax.random.normal(ks[1], (C, T), jnp.float32) / math.sqrt(C),
        # Conv1d weights with the trailing kernel dim of 1 already squeezed.
        "w_qkv": 0.05 * jax.random.normal(ks[2], (3 * C, C), jnp.float32),
        "b_qkv": 0.05 * jax.random.normal(ks[3], (3 * C,), jnp.float32),
        "w_c": 0.05 * jax.random.normal(ks[4], (C_out, C), jnp.float32),
        "b_c": 0.05 * jax.random.normal(ks[5], (C_out,), jnp.float32),
    }

    out = jax.block_until_ready(
        attention_pool2d_forward(x, params, num_head_channels))
    ref = jax.block_until_ready(
        attention_pool2d_reference(x, params, num_head_channels))
    np.testing.assert_allclose(np.asarray(out), np.asarray(ref),
                               rtol=2e-2, atol=2e-2)
    print("KERNEL_OK")
</pallas_src>

<mosaic_0001>
module attributes {stable_mosaic.version = 11 : i64} {
  func.func @kernel(%arg0: i32, %arg1: memref<1x64x128xf32, #tpu.memory_space<vmem>>, %arg2: memref<1x128xf32, #tpu.memory_space<vmem>>, %arg3: memref<64x128xf32, #tpu.memory_space<vmem>>, %arg4: memref<128x128xbf16, #tpu.memory_space<vmem>>, %arg5: memref<1x128xf32, #tpu.memory_space<vmem>>, %arg6: memref<128x128xbf16, #tpu.memory_space<vmem>>, %arg7: memref<1x128xf32, #tpu.memory_space<vmem>>, %arg8: memref<128x128xbf16, #tpu.memory_space<vmem>>, %arg9: memref<1x128xf32, #tpu.memory_space<vmem>>, %arg10: memref<128x128xbf16, #tpu.memory_space<vmem>>, %arg11: memref<128x128xbf16, #tpu.memory_space<vmem>>, %arg12: memref<1x128xf32, #tpu.memory_space<vmem>>, %arg13: memref<1x1x128xf32, #tpu.memory_space<vmem>>) attributes {dimension_semantics = [#tpu.dimension_semantics<parallel>], iteration_bounds = array<i64: 2>, scalar_prefetch = 0 : i64, scratch_operands = 0 : i64, tpu.core_type = #tpu.core_type<tc>, window_params = [{transform_indices = @transform_0, window_bounds = array<i64: 1, 64, 128>}, {pipeline_mode = #tpu.pipeline_mode<synchronous>, transform_indices = @transform_1, window_bounds = array<i64: 1, 128>}, {pipeline_mode = #tpu.pipeline_mode<synchronous>, transform_indices = @transform_2, window_bounds = array<i64: 64, 128>}, {pipeline_mode = #tpu.pipeline_mode<synchronous>, transform_indices = @transform_3, window_bounds = array<i64: 128, 128>}, {pipeline_mode = #tpu.pipeline_mode<synchronous>, transform_indices = @transform_4, window_bounds = array<i64: 1, 128>}, {pipeline_mode = #tpu.pipeline_mode<synchronous>, transform_indices = @transform_5, window_bounds = array<i64: 128, 128>}, {pipeline_mode = #tpu.pipeline_mode<synchronous>, transform_indices = @transform_6, window_bounds = array<i64: 1, 128>}, {pipeline_mode = #tpu.pipeline_mode<synchronous>, transform_indices = @transform_7, window_bounds = array<i64: 128, 128>}, {pipeline_mode = #tpu.pipeline_mode<synchronous>, transform_indices = @transform_8, window_bounds = array<i64: 1, 128>}, {pipeline_mode = #tpu.pipeline_mode<synchronous>, transform_indices = @transform_9, window_bounds = array<i64: 128, 128>}, {pipeline_mode = #tpu.pipeline_mode<synchronous>, transform_indices = @transform_10, window_bounds = array<i64: 128, 128>}, {pipeline_mode = #tpu.pipeline_mode<synchronous>, transform_indices = @transform_11, window_bounds = array<i64: 1, 128>}, {transform_indices = @transform_12, window_bounds = array<i64: 1, 1, 128>}]} {
    %c0 = arith.constant 0 : index
    %c0_0 = arith.constant 0 : index
    %c0_1 = arith.constant 0 : index
    %0 = vector.load %arg1[%c0, %c0_0, %c0_1] : memref<1x64x128xf32, #tpu.memory_space<vmem>>, vector<1x64x128xf32>
    %1 = vector.shape_cast %0 : vector<1x64x128xf32> to vector<64x128xf32>
    %cst = arith.constant dense<0.000000e+00> : vector<128xf32>
    %2 = vector.multi_reduction <add>, %1, %cst [0] : vector<64x128xf32> to vector<128xf32>
    %3 = vector.shape_cast %2 : vector<128xf32> to vector<1x128xf32>
    %cst_2 = arith.constant 1.562500e-02 : f32
    %4 = vector.broadcast %cst_2 : f32 to vector<1x128xf32>
    %5 = arith.mulf %3, %4 : vector<1x128xf32>
    %c0_3 = arith.constant 0 : index
    %c0_4 = arith.constant 0 : index
    %6 = vector.load %arg2[%c0_3, %c0_4] : memref<1x128xf32, #tpu.memory_space<vmem>>, vector<1x128xf32>
    %7 = arith.addf %5, %6 : vector<1x128xf32>
    %c0_5 = arith.constant 0 : index
    %c0_6 = arith.constant 0 : index
    %8 = vector.load %arg3[%c0_5, %c0_6] : memref<64x128xf32, #tpu.memory_space<vmem>>, vector<64x128xf32>
    %9 = arith.addf %1, %8 : vector<64x128xf32>
    %c0_7 = arith.constant 0 : index
    %c0_8 = arith.constant 0 : index
    %10 = vector.load %arg4[%c0_7, %c0_8] : memref<128x128xbf16, #tpu.memory_space<vmem>>, vector<128x128xbf16>
    %11 = arith.truncf %7 : vector<1x128xf32> to vector<1x128xbf16>
    %cst_9 = arith.constant dense<0.000000e+00> : vector<1x128xf32>
    %12 = tpu.matmul %11, %10, %cst_9 {dimension_numbers = #tpu.dot_dimension_numbers<[1], [0], [0], [1], [0, 0, 1, 1], [], []>} : vector<1x128xbf16>, vector<128x128xbf16>, vector<1x128xf32> -> vector<1x128xf32>
    %c0_10 = arith.constant 0 : index
    %c0_11 = arith.constant 0 : index
    %13 = vector.load %arg5[%c0_10, %c0_11] : memref<1x128xf32, #tpu.memory_space<vmem>>, vector<1x128xf32>
    %14 = arith.addf %12, %13 : vector<1x128xf32>
    %c0_12 = arith.constant 0 : index
    %c0_13 = arith.constant 0 : index
    %15 = vector.load %arg6[%c0_12, %c0_13] : memref<128x128xbf16, #tpu.memory_space<vmem>>, vector<128x128xbf16>
    %16 = arith.truncf %7 : vector<1x128xf32> to vector<1x128xbf16>
    %cst_14 = arith.constant dense<0.000000e+00> : vector<1x128xf32>
    %17 = tpu.matmul %16, %15, %cst_14 {dimension_numbers = #tpu.dot_dimension_numbers<[1], [0], [0], [1], [0, 0, 1, 1], [], []>} : vector<1x128xbf16>, vector<128x128xbf16>, vector<1x128xf32> -> vector<1x128xf32>
    %c0_15 = arith.constant 0 : index
    %c0_16 = arith.constant 0 : index
    %18 = vector.load %arg7[%c0_15, %c0_16] : memref<1x128xf32, #tpu.memory_space<vmem>>, vector<1x128xf32>
    %19 = arith.addf %17, %18 : vector<1x128xf32>
    %c0_17 = arith.constant 0 : index
    %c0_18 = arith.constant 0 : index
    %20 = vector.load %arg8[%c0_17, %c0_18] : memref<128x128xbf16, #tpu.memory_space<vmem>>, vector<128x128xbf16>
    %21 = arith.truncf %7 : vector<1x128xf32> to vector<1x128xbf16>
    %cst_19 = arith.constant dense<0.000000e+00> : vector<1x128xf32>
    %22 = tpu.matmul %21, %20, %cst_19 {dimension_numbers = #tpu.dot_dimension_numbers<[1], [0], [0], [1], [0, 0, 1, 1], [], []>} : vector<1x128xbf16>, vector<128x128xbf16>, vector<1x128xf32> -> vector<1x128xf32>
    %c0_20 = arith.constant 0 : index
    %c0_21 = arith.constant 0 : index
    %23 = vector.load %arg9[%c0_20, %c0_21] : memref<1x128xf32, #tpu.memory_space<vmem>>, vector<1x128xf32>
    %24 = arith.addf %22, %23 : vector<1x128xf32>
    %c0_22 = arith.constant 0 : index
    %c0_23 = arith.constant 0 : index
    %25 = vector.load %arg6[%c0_22, %c0_23] : memref<128x128xbf16, #tpu.memory_space<vmem>>, vector<128x128xbf16>
    %26 = arith.truncf %9 : vector<64x128xf32> to vector<64x128xbf16>
    %cst_24 = arith.constant dense<0.000000e+00> : vector<64x128xf32>
    %27 = tpu.matmul %26, %25, %cst_24 {dimension_numbers = #tpu.dot_dimension_numbers<[1], [0], [0], [1], [0, 0, 1, 1], [], []>} : vector<64x128xbf16>, vector<128x128xbf16>, vector<64x128xf32> -> vector<64x128xf32>
    %c0_25 = arith.constant 0 : index
    %c0_26 = arith.constant 0 : index
    %28 = vector.load %arg7[%c0_25, %c0_26] : memref<1x128xf32, #tpu.memory_space<vmem>>, vector<1x128xf32>
    %29 = vector.broadcast %28 : vector<1x128xf32> to vector<64x128xf32>
    %30 = arith.addf %27, %29 : vector<64x128xf32>
    %c0_27 = arith.constant 0 : index
    %c0_28 = arith.constant 0 : index
    %31 = vector.load %arg8[%c0_27, %c0_28] : memref<128x128xbf16, #tpu.memory_space<vmem>>, vector<128x128xbf16>
    %32 = arith.truncf %9 : vector<64x128xf32> to vector<64x128xbf16>
    %cst_29 = arith.constant dense<0.000000e+00> : vector<64x128xf32>
    %33 = tpu.matmul %32, %31, %cst_29 {dimension_numbers = #tpu.dot_dimension_numbers<[1], [0], [0], [1], [0, 0, 1, 1], [], []>} : vector<64x128xbf16>, vector<128x128xbf16>, vector<64x128xf32> -> vector<64x128xf32>
    %c0_30 = arith.constant 0 : index
    %c0_31 = arith.constant 0 : index
    %34 = vector.load %arg9[%c0_30, %c0_31] : memref<1x128xf32, #tpu.memory_space<vmem>>, vector<1x128xf32>
    %35 = vector.broadcast %34 : vector<1x128xf32> to vector<64x128xf32>
    %36 = arith.addf %33, %35 : vector<64x128xf32>
    %37 = vector.broadcast %14 : vector<1x128xf32> to vector<64x128xf32>
    %38 = arith.mulf %30, %37 : vector<64x128xf32>
    %c0_32 = arith.constant 0 : index
    %c0_33 = arith.constant 0 : index
    %39 = vector.load %arg10[%c0_32, %c0_33] : memref<128x128xbf16, #tpu.memory_space<vmem>>, vector<128x128xbf16>
    %40 = arith.truncf %38 : vector<64x128xf32> to vector<64x128xbf16>
    %cst_34 = arith.constant dense<0.000000e+00> : vector<64x128xf32>
    %41 = tpu.matmul %40, %39, %cst_34 {dimension_numbers = #tpu.dot_dimension_numbers<[1], [0], [0], [1], [0, 0, 1, 1], [], []>} : vector<64x128xbf16>, vector<128x128xbf16>, vector<64x128xf32> -> vector<64x128xf32>
    %cst_35 = arith.constant 0.176776692 : f32
    %42 = vector.broadcast %cst_35 : f32 to vector<64x128xf32>
    %43 = arith.mulf %41, %42 : vector<64x128xf32>
    %44 = arith.mulf %19, %14 : vector<1x128xf32>
    %c0_36 = arith.constant 0 : index
    %c0_37 = arith.constant 0 : index
    %45 = vector.load %arg10[%c0_36, %c0_37] : memref<128x128xbf16, #tpu.memory_space<vmem>>, vector<128x128xbf16>
    %46 = arith.truncf %44 : vector<1x128xf32> to vector<1x128xbf16>
    %cst_38 = arith.constant dense<0.000000e+00> : vector<1x128xf32>
    %47 = tpu.matmul %46, %45, %cst_38 {dimension_numbers = #tpu.dot_dimension_numbers<[1], [0], [0], [1], [0, 0, 1, 1], [], []>} : vector<1x128xbf16>, vector<128x128xbf16>, vector<1x128xf32> -> vector<1x128xf32>
    %cst_39 = arith.constant 0.176776692 : f32
    %48 = vector.broadcast %cst_39 : f32 to vector<1x128xf32>
    %49 = arith.mulf %47, %48 : vector<1x128xf32>
    %cst_40 = arith.constant dense<0xFF800000> : vector<128xf32>
    %50 = vector.multi_reduction <maximumf>, %43, %cst_40 [0] : vector<64x128xf32> to vector<128xf32>
    %51 = vector.shape_cast %50 : vector<128xf32> to vector<1x128xf32>
    %52 = arith.maximumf %51, %49 : vector<1x128xf32>
    %53 = vector.broadcast %52 : vector<1x128xf32> to vector<64x128xf32>
    %54 = arith.subf %43, %53 : vector<64x128xf32>
    %55 = math.exp %54 : vector<64x128xf32>
    %56 = arith.subf %49, %52 : vector<1x128xf32>
    %57 = math.exp %56 : vector<1x128xf32>
    %cst_41 = arith.constant dense<0.000000e+00> : vector<128xf32>
    %58 = vector.multi_reduction <add>, %55, %cst_41 [0] : vector<64x128xf32> to vector<128xf32>
    %59 = vector.shape_cast %58 : vector<128xf32> to vector<1x128xf32>
    %60 = arith.addf %59, %57 : vector<1x128xf32>
    %cst_42 = arith.constant 1.000000e+00 : f32
    %61 = vector.broadcast %cst_42 : f32 to vector<1x128xf32>
    %62 = arith.divf %61, %60 : vector<1x128xf32>
    %63 = arith.mulf %55, %36 : vector<64x128xf32>
    %cst_43 = arith.constant dense<0.000000e+00> : vector<128xf32>
    %64 = vector.multi_reduction <add>, %63, %cst_43 [0] : vector<64x128xf32> to vector<128xf32>
    %65 = vector.shape_cast %64 : vector<128xf32> to vector<1x128xf32>
    %66 = arith.mulf %57, %24 : vector<1x128xf32>
    %67 = arith.addf %65, %66 : vector<1x128xf32>
    %68 = arith.mulf %67, %62 : vector<1x128xf32>
    %c0_44 = arith.constant 0 : index
    %c0_45 = arith.constant 0 : index
    %69 = vector.load %arg11[%c0_44, %c0_45] : memref<128x128xbf16, #tpu.memory_space<vmem>>, vector<128x128xbf16>
    %70 = arith.truncf %68 : vector<1x128xf32> to vector<1x128xbf16>
    %cst_46 = arith.constant dense<0.000000e+00> : vector<1x128xf32>
    %71 = tpu.matmul %70, %69, %cst_46 {dimension_numbers = #tpu.dot_dimension_numbers<[1], [0], [0], [1], [0, 0, 1, 1], [], []>} : vector<1x128xbf16>, vector<128x128xbf16>, vector<1x128xf32> -> vector<1x128xf32>
    %c0_47 = arith.constant 0 : index
    %c0_48 = arith.constant 0 : index
    %72 = vector.load %arg12[%c0_47, %c0_48] : memref<1x128xf32, #tpu.memory_space<vmem>>, vector<1x128xf32>
    %73 = arith.addf %71, %72 : vector<1x128xf32>
    %c0_49 = arith.constant 0 : index
    %c0_50 = arith.constant 0 : index
    %c0_51 = arith.constant 0 : index
    %74 = vector.load %arg13[%c0_49, %c0_50, %c0_51] : memref<1x1x128xf32, #tpu.memory_space<vmem>>, vector<1x1x128xf32>
    %75 = vector.shape_cast %74 : vector<1x1x128xf32> to vector<1x128xf32>
    %76 = vector.shape_cast %73 : vector<1x128xf32> to vector<1x1x128xf32>
    tpu.vector_store %arg13[%c0_49, %c0_50, %c0_51], %76 {strides = array<i32>} : memref<1x1x128xf32, #tpu.memory_space<vmem>>, vector<1x1x128xf32>,
    return
  }
  func.func @transform_0(%arg0: i32) -> (i32, i32, i32) {
    %c0_i32 = arith.constant 0 : i32
    %c0_i32_0 = arith.constant 0 : i32
    %c0_i32_1 = arith.constant 0 : i32
    return %arg0, %c0_i32, %c0_i32_0 : i32, i32, i32
  }
  func.func @transform_1(%arg0: i32) -> (i32, i32) {
    %c0_i32 = arith.constant 0 : i32
    %c0_i32_0 = arith.constant 0 : i32
    %c0_i32_1 = arith.constant 0 : i32
    return %c0_i32, %c0_i32_0 : i32, i32
  }
  func.func @transform_2(%arg0: i32) -> (i32, i32) {
    %c0_i32 = arith.constant 0 : i32
    %c0_i32_0 = arith.constant 0 : i32
    %c0_i32_1 = arith.constant 0 : i32
    return %c0_i32, %c0_i32_0 : i32, i32
  }
  func.func @transform_3(%arg0: i32) -> (i32, i32) {
    %c0_i32 = arith.constant 0 : i32
    %c0_i32_0 = arith.constant 0 : i32
    %c0_i32_1 = arith.constant 0 : i32
    return %c0_i32, %c0_i32_0 : i32, i32
  }
  func.func @transform_4(%arg0: i32) -> (i32, i32) {
    %c0_i32 = arith.constant 0 : i32
    %c0_i32_0 = arith.constant 0 : i32
    %c0_i32_1 = arith.constant 0 : i32
    return %c0_i32, %c0_i32_0 : i32, i32
  }
  func.func @transform_5(%arg0: i32) -> (i32, i32) {
    %c0_i32 = arith.constant 0 : i32
    %c0_i32_0 = arith.constant 0 : i32
    %c0_i32_1 = arith.constant 0 : i32
    return %c0_i32, %c0_i32_0 : i32, i32
  }
  func.func @transform_6(%arg0: i32) -> (i32, i32) {
    %c0_i32 = arith.constant 0 : i32
    %c0_i32_0 = arith.constant 0 : i32
    %c0_i32_1 = arith.constant 0 : i32
    return %c0_i32, %c0_i32_0 : i32, i32
  }
  func.func @transform_7(%arg0: i32) -> (i32, i32) {
    %c0_i32 = arith.constant 0 : i32
    %c0_i32_0 = arith.constant 0 : i32
    %c0_i32_1 = arith.constant 0 : i32
    return %c0_i32, %c0_i32_0 : i32, i32
  }
  func.func @transform_8(%arg0: i32) -> (i32, i32) {
    %c0_i32 = arith.constant 0 : i32
    %c0_i32_0 = arith.constant 0 : i32
    %c0_i32_1 = arith.constant 0 : i32
    return %c0_i32, %c0_i32_0 : i32, i32
  }
  func.func @transform_9(%arg0: i32) -> (i32, i32) {
    %c0_i32 = arith.constant 0 : i32
    %c0_i32_0 = arith.constant 0 : i32
    %c0_i32_1 = arith.constant 0 : i32
    return %c0_i32, %c0_i32_0 : i32, i32
  }
  func.func @transform_10(%arg0: i32) -> (i32, i32) {
    %c0_i32 = arith.constant 0 : i32
    %c0_i32_0 = arith.constant 0 : i32
    %c0_i32_1 = arith.constant 0 : i32
    return %c0_i32, %c0_i32_0 : i32, i32
  }
  func.func @transform_11(%arg0: i32) -> (i32, i32) {
    %c0_i32 = arith.constant 0 : i32
    %c0_i32_0 = arith.constant 0 : i32
    %c0_i32_1 = arith.constant 0 : i32
    return %c0_i32, %c0_i32_0 : i32, i32
  }
  func.func @transform_12(%arg0: i32) -> (i32, i32, i32) {
    %c0_i32 = arith.constant 0 : i32
    %c0_i32_0 = arith.constant 0 : i32
    %c0_i32_1 = arith.constant 0 : i32
    return %arg0, %c0_i32, %c0_i32_0 : i32, i32, i32
  }
}

</mosaic_0001>

<bundles_post_ra>
// kernel: tpu_custom_call.1
= control target key start
LH: loop header
LB: loop body
LE: loop exit
PB: predicated region body
PF: predicated region fallthrough
CT: control target
= control target key end

     0   :  { %s2386_s0 = inlined_call_operand.hbm [shape: f32[2,64,128], index: 0, kind: input, shape index: {}]   ;;  %s2387_s1 = inlined_call_operand.hbm [shape: f32[1,128], index: 1, kind: input, shape index: {}]   ;;  %s2388_s2 = inlined_call_operand.hbm [shape: f32[64,128], index: 2, kind: input, shape index: {}]   ;;  %s2389_s3 = inlined_call_operand.hbm [shape: bf16[128,128], index: 3, kind: input, shape index: {}]   ;;  %s2390_s4 = inlined_call_operand.vmem [shape: f32[1,128], index: 4, kind: input, shape index: {}]   ;;  %s2391_s5 = inlined_call_operand.hbm [shape: bf16[128,128], index: 5, kind: input, shape index: {}]   ;;  %s2392_s6 = inlined_call_operand.vmem [shape: f32[1,128], index: 6, kind: input, shape index: {}]   ;;  %s2393_s7 = inlined_call_operand.hbm [shape: bf16[128,128], index: 7, kind: input, shape index: {}]   ;;  %s2394_s8 = inlined_call_operand.vmem [shape: f32[1,128], index: 8, kind: input, shape index: {}]   ;;  %s2395_s9 = inlined_call_operand.hbm [shape: bf16[128,128], index: 9, kind: input, shape index: {}]   ;;  %s2396_s10 = inlined_call_operand.hbm [shape: bf16[128,128], index: 10, kind: input, shape index: {}]   ;;  %s2397_s11 = inlined_call_operand.vmem [shape: f32[1,128], index: 11, kind: input, shape index: {}]   ;;  %s2398_s12 = inlined_call_operand.hbm [shape: f32[2,1,128], index: 12, kind: output, shape index: {}]  }
   0x1   :  { %2403 = sst [smem:[#allocation23_spill]] %s2387_s1 }
   0x2   :  { %2404 = sst [smem:[#allocation24_spill]] %s2388_s2 }
   0x3   :  { %2405 = sst [smem:[#allocation25_spill]] %s2389_s3 }
   0x4   :  { %2406 = sst [smem:[#allocation26_spill]] %s2391_s5 }
   0x5   :  { %2407 = sst [smem:[#allocation27_spill]] %s2393_s7 }
   0x6   :  { %2408 = sst [smem:[#allocation28_spill]] %s2395_s9 }
   0x7   :  { %17 = vsyncpa [#allocation3], 0 }
   0x8   :  { %19 = vsyncpa [#allocation3 + $0x1], 0 }
   0x9   :  { %20 = vsyncpa [#allocation6], 0 }
   0xa   :  { %21 = vsyncpa [#allocation9], 0 }
   0xb   :  { %22 = vsyncpa [#allocation12], 0 }
   0xc   :  { %23 = vsyncpa [#allocation15], 0 }
   0xd   :  { %24 = vsyncpa [#allocation4], 0 }
   0xe   :  { %26 = vsyncpa [#allocation4 + $0x1], 0  ;;  %s2109_s21 = smov 0   ;;  %s2111_s22 = smov 0  }
   0xf   :  { %s2113_s23 = smov 0   ;;  %s2115_s24 = smov 0  }
  0x10 LB: > { %s2409_s1 = sld [smem:[#allocation23_spill]]  ;;  %s2133_s28 = sadd.s32 4294967295, %s2031_s24   ;;  %s2031_s24 = sphi %s2115_s24, %s2428_s24   ;;  %s2027_s23 = sphi %s2113_s23, %s2427_s23   ;;  %s2023_s22 = sphi %s2111_s22, %s2426_s22   ;;  %s2019_s21 = sphi %s2109_s21, %s2425_s21  }
  0x11   : > { %p1342_p0 = scmp.ge.s32.totalorder %s2031_s24, 1  ;;  %p53_p1 = scmp.eq.s32.totalorder %s2133_s28, 0 }
  0x12   : > { %p320_p2 = scmp.lt.s32.totalorder %s2031_s24, 3  ;;  %s2033_s30 = smov [#allocation5]  }
  0x13   : > { %s334_s13 = sshll.u32 %s2033_s30, 4  ;;  %s2411_s3 = sld [smem:[#allocation25_spill]]  ;;  %s335_s13 = int_to_ptr.vmem [resolvable:$true] %s334_s13 }
  0x14   : > { %p2138_p3 = pnand %p1342_p0, %p320_p2  ;;  %s2034_s18 = smov [#allocation8]  }
  0x15   : > { %s359_s19 = sshll.u32 %s2034_s18, 4  ;;  %s2399_s20 = smov 64   ;;  %s360_s19 = int_to_ptr.vmem [resolvable:$true] %s359_s19 }
  0x16   : > { %s332_s27 = sshll.u32 %s2409_s1, 4  ;;  %p1598_p5 = pneg %p2138_p3  ;;  %s333_s27 = int_to_ptr.hbm [resolvable:$true] %s332_s27 }
  0x17   : > { %s2036_s25 = smov 4   ;;  %s2413_s7 = sld [smem:[#allocation27_spill]] }
  0x18   : > { %p2150_p6 = pnand %p1598_p5, %p53_p1  ;;  %s2037_s15 = smov [#allocation11]  }
  0x19   : > { %s357_s16 = sshll.u32 %s2411_s3, 4  ;;  %s393_s1 = sshll.u32 %s2037_s15, 4  ;;  %s358_s16 = int_to_ptr.hbm [resolvable:$true] %s357_s16  ;;  %s394_s1 = int_to_ptr.vmem [resolvable:$true] %s393_s1 }
  0x1a   : > { %1601 = dma.hbm_to_vmem [thread:$0]  (!%p2150_p6), %s333_s27, 16, %s335_s13, [#allocation6]  }
  0x1b   : > { %1607 = dma.hbm_to_vmem [thread:$0]  (!%p2150_p6), %s358_s16, 1024, %s360_s19, [#allocation9], %s2399_s20, %s2399_s20, %s2036_s25  }
  0x1c   : > { %s2414_s2 = sld [smem:[#allocation24_spill]]  ;;  %s2038_s13 = smov [#allocation7]  }
  0x1d   : > { %s391_s14 = sshll.u32 %s2413_s7, 4  ;;  %s345_s16 = sshll.u32 %s2038_s13, 4  ;;  %s392_s14 = int_to_ptr.hbm [resolvable:$true] %s391_s14  ;;  %s346_s16 = int_to_ptr.vmem [resolvable:$true] %s345_s16 }
  0x1e   : > { %1613 = dma.hbm_to_vmem [thread:$0]  (!%p2150_p6), %s392_s14, 1024, %s394_s1, [#allocation12], %s2399_s20, %s2399_s20, %s2036_s25  }
  0x1f   : > { %s2401_s19 = smov 128   ;;  %s2402_s26 = smov 8  }
  0x20   : > { %s2415_s5 = sld [smem:[#allocation26_spill]]  ;;  %s2041_s18 = smov [#allocation10]  }
  0x21   : > { %s376_s1 = sshll.u32 %s2041_s18, 4  ;;  %s2416_s9 = sld [smem:[#allocation28_spill]]  ;;  %s377_s1 = int_to_ptr.vmem [resolvable:$true] %s376_s1 }
  0x22   : > { %s343_s27 = sshll.u32 %s2414_s2, 4  ;;  %s2417_s2 = smov 64   ;;  %s344_s27 = int_to_ptr.hbm [resolvable:$true] %s343_s27 }
  0x23   : > { %1604 = dma.hbm_to_vmem [thread:$0]  (!%p2150_p6), %s344_s27, 1024, %s346_s16, [#allocation6], %s2401_s19, %s2401_s19, %s2402_s26  }
  0x24   : > { %s2042_s27 = smov [#allocation13]   ;;  %s422_s18 = sshll.u32 %s2396_s10, 4  ;;  %s423_s18 = int_to_ptr.hbm [resolvable:$true] %s422_s18 }
  0x25   : > { %s410_s16 = sshll.u32 %s2042_s27, 4  ;;  %s1341_s14 = sadd.s32 4294967294, %s2031_s24   ;;  %s411_s16 = int_to_ptr.vmem [resolvable:$true] %s410_s16 }
  0x26   : > { %s374_s15 = sshll.u32 %s2415_s5, 4  ;;  %s2203_s13 = sadd.s32 1, %s2031_s24   ;;  %s375_s15 = int_to_ptr.hbm [resolvable:$true] %s374_s15 }
  0x27   : > { %s408_s20 = sshll.u32 %s2416_s9, 4  ;;  %s39_s27 = sadd.s32 1, %s2027_s23  ;;  %s409_s20 = int_to_ptr.hbm [resolvable:$true] %s408_s20 }
  0x28   : > { %1610 = dma.hbm_to_vmem [thread:$0]  (!%p2150_p6), %s375_s15, 1024, %s377_s1, [#allocation9], %s2417_s2, %s2417_s2, %s2036_s25  }
  0x29   : > { %1616 = dma.hbm_to_vmem [thread:$0]  (!%p2150_p6), %s409_s20, 1024, %s411_s16, [#allocation12], %s2417_s2, %s2417_s2, %s2036_s25  }
  0x2a   : > { %s2043_s15 = smov [#allocation14]   ;;  %s36_s3 = ssub.s32 %s2031_s24, %s2203_s13 }
  0x2b   : > { %s424_s1 = sshll.u32 %s2043_s15, 4  ;;  %p46_p7 = scmp.ne.s32.totalorder %s2027_s23, %s2023_s22  ;;  %s425_s1 = int_to_ptr.vmem [resolvable:$true] %s424_s1 }
  0x2c   : > { %1619 = dma.hbm_to_vmem [thread:$0]  (!%p2150_p6), %s423_s18, 1024, %s425_s1, [#allocation15], %s2417_s2, %s2417_s2, %s2036_s25  }
  0x2d   : > { %p37_p8 = scmp.eq.s32.totalorder %s36_s3, 0  ;;  %p47_p9 = scmp.eq.s32.totalorder %s2031_s24, 0 }
  0x2e   : > { %p52_p10 = scmp.ne.s32.totalorder %s2023_s22, %s2019_s21  ;;  %p307_p11 = scmp.eq.s32.totalorder %s2133_s28, 1 }
  0x2f   : > { %s2215_s20 = scalar_select %p37_p8, %s2027_s23, %s39_s27  }
  0x30   : > { %p2219_p12 = por %p53_p1, %p52_p10  ;;  %p2223_p13 = por %p307_p11, %p46_p7 }
  0x31   : > { %p313_p0 = scmp.eq.s32.totalorder %s1341_s14, 1  ;;  %p48_p2 = por %p47_p9, %p46_p7 }
  0x32   : > { %s441_s25 = sand.u32 1, %s2027_s23   ;;  %p1635_p6 = scmp.lt.s32.totalorder %s2031_s24, 2 }
  0x33   : > { %p2228_p5 = por %p313_p0, %p52_p10  ;;  %s1351_s30 = sshll.u32 %s441_s25, 6 }
  0x34   : > { %s1525_s18 = sshll.u32 %s2031_s24, 6  ;;  %s445_s19 = scalar_lea.vmem [#allocation2], %s1351_s30 }
  0x35   : > { %s450_s27 = scalar_lea.hbm %s2386_s0, %s1525_s18  ;;  %s453_s26 = sshll.u32 %s445_s19, 4  ;;  %s454_s26 = int_to_ptr.vmem [resolvable:$true] %s453_s26 }
  0x36   : > { %s451_s3 = sshll.u32 %s450_s27, 4  ;;  %p2237_p8 = pnand %p1635_p6, %p48_p2  ;;  %s452_s3 = int_to_ptr.hbm [resolvable:$true] %s451_s3 }
  0x37   : > { %s442_s5 = scalar_lea.sflag [#allocation3], %s441_s25  ;;  %s1919_s7 = sshra.s32 %s452_s3, 4  ;;  %s1920_s7 = int_to_ptr.hbm [resolvable:$true] %s1919_s7 }
  0x38   : > { %s1921_s9 = scalar_lea.hbm %s1920_s7, 64  ;;  %p1923_p9 = pneg %p2237_p8 }
  0x39   : > { %p1922_p7 = scmp.ne.s32.totalorder %s1920_s7, %s1921_s9  ;;  %s1926_s19 = scalar_lea.hbm %s2386_s0, 128 }
  0x3a   : > { %p1927_p0 = scmp.lt.s32.totalorder %s1920_s7, %s2386_s0  ;;  %p1928_p2 = scmp.lt.s32.totalorder %s1926_s19, %s1921_s9 }
  0x3b   : > { %p1924_p10 = pnand %p1923_p9, %p1922_p7 }
  0x3c   : > { %p1929_p6 = por %p1928_p2, %p1927_p0 }
  0x3d   : > { %p1925_p11 = pneg %p1924_p10 }
  0x3f   : > { %p1930_p4 = pnand %p1929_p6, %p1925_p11 }
  0x41   : > { %1933 = shalt.err (!%p1930_p4)
}
  0x42   : > { %s2422_s25 = smov 8   ;;  %s2423_s27 = smov 128  }
  0x43   : > { %1623 = dma.hbm_to_vmem [thread:$0]  (!%p2237_p8), %s452_s3, 1024, %s454_s26, %s442_s5, %s2423_s27, %s2423_s27, %s2422_s25  }
  0x44   : > { %465 = sbr.rel (%p2138_p3) target bundleno = 667 (0x29b), region = 68  ;;  %s2257_s18 = sand.u32 (!%p2138_p3), 1, %s2023_s22  }
  0x45   : > { %s1355_s7 = sshll.u32 (!%p2138_p3), %s2257_s18, 6  ;;  %s468_s9 = scalar_lea.sflag (!%p2138_p3), [#allocation3], %s2257_s18 }
  0x46   : > { %s2261_s15 = scalar_lea.vmem (!%p2138_p3), [#allocation2], %s1355_s7 }
  0x49   : > { %1994 = dma.done.wait (%p2219_p12), %s468_s9, 1024  }
  0x4a   : > { %1996 = vsyncadd (%p2219_p12), %s468_s9, 4294966272 }
  0x4b   : > { %1998 = dma.done.wait (%p53_p1), [#allocation6], 1040  }
  0x4c   : > { %2000 = vsyncadd (%p53_p1), [#allocation6], 4294966256 }
  0x4d   : > { %2002 = dma.done.wait (%p53_p1), [#allocation9], 2048  }
  0x4e   : > { %2004 = vsyncadd (%p53_p1), [#allocation9], 4294965248 }
  0x4f   : > { %2006 = dma.done.wait (%p53_p1), [#allocation12], 2048  }
  0x50   : > { %2008 = vsyncadd (%p53_p1), [#allocation12], 4294965248 }
  0x51   : > { %2010 = dma.done.wait (%p53_p1), [#allocation15], 1024  }
  0x52   : > { %2012 = vsyncadd (%p53_p1), [#allocation15], 4294966272  ;;  %v1541_v0 = vld [vmem:[#allocation10 + $0x38] sm:$0xff]  ;;  %v1540_v2 = vld [vmem:[#allocation10 + $0x30] sm:$0xff]  ;;  %s1204_s9 = scalar_lea.hbm %s2398_s12, %s2133_s28  ;;  %s546_s29 = scalar_lea.vmem [#allocation16], %s2257_s18 }
  0x53   : > { %v1533_v1 = vld [vmem:[#allocation8 + $0x38] sm:$0xff]  ;;  %829 = vmatpush.bf16.msra.mxu3 %v1541_v0  ;;  %v1532_v3 = vld [vmem:[#allocation8 + $0x30] sm:$0xff]  ;;  %731 = vmatpush.bf16.msra.mxu1 %v1541_v0  ;;  %v548_v5 = vld [vmem:[%s2261_s15 + $0x8] sm:$0xff]  ;;  %s1206_s26 = sshll.u32 %s546_s29, 4  ;;  %s1208_s17 = sshll.u32 %s1204_s9, 4  ;;  %s1207_s26 = int_to_ptr.vmem [resolvable:$true] %s1206_s26  ;;  %s1209_s17 = int_to_ptr.hbm [resolvable:$true] %s1208_s17 }
  0x54   : > { %653 = vmatpush.bf16.msra.mxu0 %v1533_v1  ;;  %v547_v4 = vld [vmem:[%s2261_s15] sm:$0xff]  ;;  %v2286_v6 = vld [vmem:[%s2261_s15 + $0x10] sm:$0xff]  ;;  %v550_v10 = vld [vmem:[%s2261_s15 + $0x18] sm:$0xff]  ;;  %s1196_s3 = scalar_lea.sflag [#allocation4], %s2257_s18  ;;  %s1963_s14 = sshra.s32 %s1209_s17, 4  ;;  %s1964_s14 = int_to_ptr.hbm [resolvable:$true] %s1963_s14 }
  0x55   : > { %v1539_v7 = vld [vmem:[#allocation10 + $0x28] sm:$0xff]  ;;  %v555_v9 = vadd.f32 %v548_v5, %v547_v4  ;;  %v2291_v12 = vld [vmem:[%s2261_s15 + $0x20] sm:$0xff]  ;;  %v2302_v22 = vld [vmem:[%s2261_s15 + $0x38] sm:$0xff]  ;;  %s1965_s19 = scalar_lea.hbm %s1964_s14, 1  ;;  %s1969_s1 = scalar_lea.hbm %s2398_s12, 2 }
  0x56   : > { %v1531_v8 = vld [vmem:[#allocation8 + $0x28] sm:$0xff]  ;;  %v1538_v13 = vld [vmem:[#allocation10 + $0x20] sm:$0xff]  ;;  %v1537_v19 = vld [vmem:[#allocation10 + $0x18] sm:$0xff]  ;;  %p1966_p1 = scmp.ne.s32.totalorder %s1964_s14, %s1965_s19  ;;  %p1970_p12 = scmp.lt.s32.totalorder %s1964_s14, %s2398_s12 }
  0x57   : > { %830 = vmatpush.bf16.msra.mxu3 %v1540_v2  ;;  %732 = vmatpush.bf16.msra.mxu1 %v1540_v2  ;;  %v556_v11 = vadd.f32 %v555_v9, %v2286_v6  ;;  %v1530_v14 = vld [vmem:[#allocation8 + $0x20] sm:$0xff]  ;;  %v2298_v18 = vld [vmem:[%s2261_s15 + $0x30] sm:$0xff]  ;;  %v1529_v20 = vld [vmem:[#allocation8 + $0x18] sm:$0xff]  ;;  %p1971_p8 = scmp.lt.s32.totalorder %s1969_s1, %s1965_s19 }
  0x58   : > { %654 = vmatpush.bf16.msra.mxu0 %v1532_v3  ;;  %v2294_v16 = vld [vmem:[%s2261_s15 + $0x28] sm:$0xff]  ;;  %v1536_v24 = vld [vmem:[#allocation10 + $0x10] sm:$0xff]  ;;  %v569_v42 = vld [vmem:[#allocation5] sm:$0x1]  ;;  %p1967_p3 = pnand %p1966_p1, %p2223_p13 }
  0x59   : > { %v557_v15 = vadd.f32 %v556_v11, %v550_v10  ;;  %v1528_v25 = vld [vmem:[#allocation8 + $0x10] sm:$0xff]  ;;  %v1535_v28 = vld [vmem:[#allocation10 + $0x8] sm:$0xff]  ;;  %v571_v30 = vld [vmem:[#allocation7] sm:$0xff]  ;;  %p1972_p7 = por %p1971_p8, %p1970_p12 }
  0x5a   : > { %v1527_v29 = vld [vmem:[#allocation8 + $0x8] sm:$0xff]  ;;  %v579_v34 = vadd.f32 %v571_v30, %v547_v4  ;;  %v1534_v36 = vld [vmem:[#allocation10] sm:$0xff]  ;;  %v573_v46 = vld [vmem:[#allocation7 + $0x10] sm:$0xff]  ;;  %p1968_p4 = pneg %p1967_p3 }
  0x5b   : > { %831 = vmatpush.bf16.msra.mxu3 %v1539_v7  ;;  %733 = vmatpush.bf16.msra.mxu1 %v1539_v7  ;;  %v558_v17 = vadd.f32 %v557_v15, %v2291_v12  ;;  %v572_v31 = vld [vmem:[#allocation7 + $0x8] sm:$0xff]  ;;  %v1526_v37 = vld [vmem:[#allocation8] sm:$0xff]  ;;  %v574_v47 = vld [vmem:[#allocation7 + $0x18] sm:$0xff]  ;;  %v581_v48 = vadd.f32 %v573_v46, %v2286_v6 }
  0x5c   : > { %655 = vmatpush.bf16.msra.mxu0 %v1531_v8  ;;  %v580_v35 = vadd.f32 %v572_v31, %v548_v5  ;;  %v582_v49 = vadd.f32 %v574_v47, %v550_v10  ;;  %v1549_v51 = vld [vmem:[#allocation11 + $0x38] sm:$0xff]  ;;  %v1548_v52 = vld [vmem:[#allocation11 + $0x30] sm:$0xff]  ;;  %v575_v54 = vld [vmem:[#allocation7 + $0x20] sm:$0xff]  ;;  %p1973_p9 = pnand %p1972_p7, %p1968_p4 }
  0x5d   : > { %v559_v21 = vadd.f32 %v558_v17, %v2294_v16  ;;  %809 = vmatpush.bf16.msra.mxu2 %v1549_v51  ;;  %v1557_v53 = vld [vmem:[#allocation13 + $0x38] sm:$0xff]  ;;  %v576_v55 = vld [vmem:[#allocation7 + $0x28] sm:$0xff]  ;;  %v1556_v57 = vld [vmem:[#allocation13 + $0x30] sm:$0xff]  ;;  %v583_v58 = vadd.f32 %v575_v54, %v2291_v12 }
  0x5e   : > { %v2306_v40 = vpack.c.bf16 %v580_v35, %v579_v34  ;;  %v823_v50 = vpack.c.bf16 %v582_v49, %v581_v48  ;;  %v1547_v56 = vld [vmem:[#allocation11 + $0x28] sm:$0xff]  ;;  %v584_v59 = vadd.f32 %v576_v55, %v2294_v16  ;;  %v1546_v60 = vld [vmem:[#allocation11 + $0x20] sm:$0xff]  ;;  %v1545_v63 = vld [vmem:[#allocation11 + $0x18] sm:$0xff] }
  0x5f   : > { %832 = vmatpush.bf16.msra.mxu3 %v1538_v13  ;;  %734 = vmatpush.bf16.msra.mxu1 %v1538_v13  ;;  %v560_v23 = vadd.f32 %v559_v21, %v2298_v18  ;;  %v1555_v61 = vld [vmem:[#allocation13 + $0x28] sm:$0xff]  ;;  %v1554_v0 = vld [vmem:[#allocation13 + $0x20] sm:$0xff]  ;;  %v1544_v1 = vld [vmem:[#allocation11 + $0x10] sm:$0xff] }
  0x60   : > { %656 = vmatpush.bf16.msra.mxu0 %v1530_v14  ;;  %v824_v62 = vpack.c.bf16 %v584_v59, %v583_v58  ;;  %v1553_v2 = vld [vmem:[#allocation13 + $0x18] sm:$0xff]  ;;  %v577_v3 = vld [vmem:[#allocation7 + $0x30] sm:$0xff]  ;;  %v1543_v5 = vld [vmem:[#allocation11 + $0x8] sm:$0xff] }
  0x61   : > { %v561_v26 = vadd.f32 %v560_v23, %v2302_v22  ;;  %810 = vmatpush.bf16.msra.mxu2 %v1548_v52  ;;  %v578_v4 = vld [vmem:[#allocation7 + $0x38] sm:$0xff]  ;;  %v1552_v6 = vld [vmem:[#allocation13 + $0x10] sm:$0xff]  ;;  %v585_v7 = vadd.f32 %v577_v3, %v2298_v18  ;;  %v1542_v9 = vld [vmem:[#allocation11] sm:$0xff] }
  0x62   : > { %v586_v8 = vadd.f32 %v578_v4, %v2302_v22  ;;  %v1551_v11 = vld [vmem:[#allocation13 + $0x8] sm:$0xff]  ;;  %v1550_v12 = vld [vmem:[#allocation13] sm:$0xff]  ;;  %v604_v13 = vld [vmem:[%s2390_s4] sm:$0x1] }
  0x63   : > { %833 = vmatpush.bf16.msra.mxu3 %v1537_v19  ;;  %735 = vmatpush.bf16.msra.mxu1 %v1537_v19  ;;  %v562_v27 = vrot.slane %v561_v26, 4  ;;  %v682_v14 = vld [vmem:[%s2392_s6] sm:$0x1] }
  0x64   : > { %657 = vmatpush.bf16.msra.mxu0 %v1529_v20  ;;  %v825_v10 = vpack.c.bf16 %v586_v8, %v585_v7  ;;  %v1687_v21 = vld [vmem:[%s2392_s6] ss:$0 sm:$0xff] }
  0x65   : > { %v563_v32 = vadd.f32 %v562_v27, %v561_v26  ;;  %811 = vmatpush.bf16.msra.mxu2 %v1547_v56 }
  0x67   : > { %834 = vmatpush.bf16.msra.mxu3 %v1536_v24  ;;  %736 = vmatpush.bf16.msra.mxu1 %v1536_v24  ;;  %v564_v33 = vrot.slane %v563_v32, 2 }
  0x68   : > { %658 = vmatpush.bf16.msra.mxu0 %v1528_v25 }
  0x69   : > { %v565_v38 = vadd.f32 %v564_v33, %v563_v32  ;;  %812 = vmatpush.bf16.msra.mxu2 %v1546_v60 }
  0x6b   : > { %835 = vmatpush.bf16.msra.mxu3 %v1535_v28  ;;  %737 = vmatpush.bf16.msra.mxu1 %v1535_v28  ;;  %v566_v39 = vrot.slane %v565_v38, 1 }
  0x6c   : > { %659 = vmatpush.bf16.msra.mxu0 %v1527_v29 }
  0x6d   : > { %v567_v41 = vadd.f32 %v566_v39, %v565_v38  ;;  %813 = vmatpush.bf16.msra.mxu2 %v1545_v63 }
  0x6f   : > { %836 = vmatpush.bf16.msra.mxu3 %v1534_v36  ;;  %738 = vmatpush.bf16.msra.mxu1 %v1534_v36  ;;  %v568_v43 = vmul.f32 0.015625, %v567_v41 }
  0x70   : > { %660 = vmatpush.bf16.msra.mxu0 %v1526_v37 }
  0x71   : > { %v570_v44 = vadd.f32 %v569_v42, %v568_v43  ;;  %814 = vmatpush.bf16.msra.mxu2 %v1544_v1 }
  0x72   : > { %837 = vmatmul.bf16.vlgmr.msra.gmra.mxu3 %v2306_v40 }
  0x73   : > { %v603_v45 = vpack.c.bf16 %v570_v44, %v570_v44  ;;  %967 = vmatpush.bf16.msrb.mxu1 %v1557_v53 }
  0x74   : > { %861 = vmatpush.bf16.msrb.mxu0 %v1549_v51 }
  0x75   : > { %661 = vmatmul.bf16.vlgmr.msra.gmra.mxu0 %v603_v45  ;;  %739 = vmatmul.bf16.vlgmr.msra.gmra.mxu1 %v603_v45 }
  0x76   : > { %815 = vmatpush.bf16.msra.mxu2 %v1543_v5 }
  0x77   : > { %968 = vmatpush.bf16.msrb.mxu1 %v1556_v57 }
  0x78   : > { %862 = vmatpush.bf16.msrb.mxu0 %v1548_v52 }
  0x7a   : > { %816 = vmatpush.bf16.msra.mxu2 %v1542_v9 }
  0x7b   : > { %969 = vmatpush.bf16.msrb.mxu1 %v1555_v61 }
  0x7c   : > { %863 = vmatpush.bf16.msrb.mxu0 %v1547_v56 }
  0x7d   : > { %817 = vmatmul.bf16.vlgmr.msra.gmra.mxu2 %v603_v45 }
  0x7e   : > { %1006 = vmatpush.bf16.msrb.mxu2 %v1557_v53 }
  0x7f   : > { %970 = vmatpush.bf16.msrb.mxu1 %v1554_v0 }
  0x80   : > { %864 = vmatpush.bf16.msrb.mxu0 %v1546_v60 }
  0x82   : > { %842 = vmatmul.bf16.gmra.mxu3 %v823_v50  ;;  %1007 = vmatpush.bf16.msrb.mxu2 %v1556_v57 }
  0x83   : > { %971 = vmatpush.bf16.msrb.mxu1 %v1553_v2 }
  0x84   : > { %865 = vmatpush.bf16.msrb.mxu0 %v1545_v63 }
  0x86   : > { %1008 = vmatpush.bf16.msrb.mxu2 %v1555_v61 }
  0x87   : > { %972 = vmatpush.bf16.msrb.mxu1 %v1552_v6 }
  0x88   : > { %866 = vmatpush.bf16.msrb.mxu0 %v1544_v1 }
  0x8a   : > { %1009 = vmatpush.bf16.msrb.mxu2 %v1554_v0 }
  0x8b   : > { %973 = vmatpush.bf16.msrb.mxu1 %v1551_v11 }
  0x8c   : > { %867 = vmatpush.bf16.msrb.mxu0 %v1543_v5 }
  0x8e   : > { %1010 = vmatpush.bf16.msrb.mxu2 %v1553_v2 }
  0x8f   : > { %974 = vmatpush.bf16.msrb.mxu1 %v1550_v12 }
  0x90   : > { %868 = vmatpush.bf16.msrb.mxu0 %v1542_v9 }
  0x92   : > { %847 = vmatmul.bf16.gmra.mxu3 %v824_v62  ;;  %1011 = vmatpush.bf16.msrb.mxu2 %v1552_v6 }
  0x93   : > { %869 = vmatmul.bf16.vlgmr.msrb.gmra.mxu0 %v2306_v40 }
  0x96   : > { %1012 = vmatpush.bf16.msrb.mxu2 %v1551_v11 }
  0x9a   : > { %1013 = vmatpush.bf16.msrb.mxu2 %v1550_v12 }
  0xa2   : > { %852 = vmatmul.bf16.gmra.mxu3 %v825_v10 }
  0xa3   : > { %874 = vmatmul.bf16.gmra.mxu0 %v823_v50 }
  0xb3   : > { %879 = vmatmul.bf16.gmra.mxu0 %v824_v62 }
  0xc3   : > { %884 = vmatmul.bf16.gmra.mxu0 %v825_v10 }
  0xf2   : > { %v662_v15 = vpop.f32.mrf.mxu0  ;;  %v740_v16 = vpop.f32.mrf.mxu1 }
  0xf3   : > { %v663_v17 = vadd.f32 %v662_v15, %v604_v13  ;;  %v741_v18 = vadd.f32 %v740_v16, %v682_v14 }
  0xf5   : > { %v838_v19 = vpop.f32.mrf.mxu3  ;;  %v1004_v20 = vmul.f32 %v741_v18, %v663_v17  ;;  %v890_v23 = vperm.slane %v663_v17, 0 }
  0xf6   : > { %v839_v24 = vadd.f32 %v1687_v21, %v838_v19 }
  0xf7   : > { %v1005_v22 = vpack.c.bf16 %v1004_v20, %v1004_v20 }
  0xf8   : > { %v891_v29 = vmul.f32 %v890_v23, %v839_v24 }
  0xf9   : > { %1014 = vmatmul.bf16.vlgmr.msrb.gmra.mxu2 %v1005_v22 }
  0xfa   : > { %v664_v25 = vpop.f32.mrf.mxu0  ;;  %v742_v26 = vpop.f32.mrf.mxu1 }
  0xfd   : > { %v840_v27 = vpop.f32.mrf.mxu3 }
  0xfe   : > { %v841_v28 = vadd.f32 %v1687_v21, %v840_v27 }
 0x100   : > { %v892_v30 = vmul.f32 %v890_v23, %v841_v28  ;;  %v2324_v47 = vpop.f32.mrf.mxu2 }
 0x102   : > { %v915_v31 = vpack.c.bf16 %v892_v30, %v891_v29 }
 0x104   : > { %975 = vmatmul.bf16.vlgmr.msrb.gmra.mxu1 %v915_v31 }
 0x105   : > { %v843_v32 = vpop.f32.mrf.mxu3 }
 0x106   : > { %v844_v33 = vadd.f32 %v1687_v21, %v843_v32 }
 0x108   : > { %v893_v36 = vmul.f32 %v890_v23, %v844_v33  ;;  %v820_v51 = vpop.f32.mrf.mxu2 }
 0x10d   : > { %v845_v34 = vpop.f32.mrf.mxu3 }
 0x10e   : > { %v846_v35 = vadd.f32 %v1687_v21, %v845_v34 }
 0x110   : > { %v894_v37 = vmul.f32 %v890_v23, %v846_v35  ;;  %v2326_v61 = vpop.f32.mrf.mxu0 }
 0x112   : > { %v916_v38 = vpack.c.bf16 %v894_v37, %v893_v36 }
 0x114   : > { %980 = vmatmul.bf16.gmra.mxu1 %v916_v38 }
 0x115   : > { %v848_v39 = vpop.f32.mrf.mxu3 }
 0x116   : > { %v849_v40 = vadd.f32 %v1687_v21, %v848_v39 }
 0x118   : > { %v895_v43 = vmul.f32 %v890_v23, %v849_v40  ;;  %v2328_v63 = vpop.f32.mrf.mxu0 }
 0x11d   : > { %v850_v41 = vpop.f32.mrf.mxu3 }
 0x11e   : > { %v851_v42 = vadd.f32 %v1687_v21, %v850_v41  ;;  %v760_v41 = vld [vmem:[%s2394_s8] sm:$0x1] }
 0x120   : > { %v896_v44 = vmul.f32 %v890_v23, %v851_v42  ;;  %v2330_v2 = vpop.f32.mrf.mxu0 }
 0x122   : > { %v917_v45 = vpack.c.bf16 %v896_v44, %v895_v43  ;;  %v1565_v44 = vld [vmem:[#allocation14 + $0x38] sm:$0xff] }
 0x123   : > { %1181 = vmatpush.bf16.msra.mxu2 %v1565_v44 }
 0x124   : > { %985 = vmatmul.bf16.gmra.mxu1 %v917_v45  ;;  %v1688_v45 = vld [vmem:[%s2394_s8] ss:$0 sm:$0xff] }
 0x125   : > { %v853_v46 = vpop.f32.mrf.mxu3 }
 0x126   : > { %v854_v48 = vadd.f32 %v1687_v21, %v853_v46 }
 0x128   : > { %v897_v52 = vmul.f32 %v890_v23, %v854_v48  ;;  %v877_v16 = vpop.f32.mrf.mxu0 }
 0x12d   : > { %v855_v49 = vpop.f32.mrf.mxu3 }
 0x12e   : > { %v856_v50 = vadd.f32 %v1687_v21, %v855_v49  ;;  %v1564_v49 = vld [vmem:[#allocation14 + $0x30] sm:$0xff] }
 0x12f   : > { %1182 = vmatpush.bf16.msra.mxu2 %v1564_v49 }
 0x130   : > { %v898_v53 = vmul.f32 %v890_v23, %v856_v50  ;;  %v880_v23 = vpop.f32.mrf.mxu0  ;;  %v819_v50 = vadd.f32 %v2324_v47, %v760_v41 }
 0x132   : > { %v918_v54 = vpack.c.bf16 %v898_v53, %v897_v52 }
 0x134   : > { %990 = vmatmul.bf16.gmra.mxu1 %v918_v54 }
 0x138   : > { %v882_v31 = vpop.f32.mrf.mxu0 }
 0x140   : > { %v885_v54 = vpop.f32.mrf.mxu0 }
 0x17c   : > { %v1015_v55 = vpop.f32.mrf.mxu2 }
 0x17d   : > { %v1019_v26 = vmul.f32 0.17677669, %v1015_v55 }
 0x181   : > { %v976_v56 = vpop.f32.mrf.mxu1 }
 0x182   : > { %v996_v7 = vmul.f32 0.17677669, %v976_v56  ;;  %v871_v56 = vadd.f32 %v1688_v45, %v2326_v61  ;;  %v1562_v61 = vld [vmem:[#allocation14 + $0x20] sm:$0xff] }
 0x184   : > { %v1017_v57 = vpop.f32.mrf.mxu2 }
 0x189   : > { %v978_v58 = vpop.f32.mrf.mxu1 }
 0x18a   : > { %v997_v4 = vmul.f32 0.17677669, %v978_v58  ;;  %v1563_v58 = vld [vmem:[#allocation14 + $0x28] sm:$0xff] }
 0x18b   : > { %1183 = vmatpush.bf16.msra.mxu2 %v1563_v58 }
 0x18f   : > { %1184 = vmatpush.bf16.msra.mxu2 %v1562_v61 }
 0x191   : > { %v981_v59 = vpop.f32.mrf.mxu1 }
 0x192   : > { %v998_v9 = vmul.f32 0.17677669, %v981_v59 }
 0x199   : > { %v983_v60 = vpop.f32.mrf.mxu1 }
 0x19a   : > { %v999_v10 = vmul.f32 0.17677669, %v983_v60  ;;  %v873_v60 = vadd.f32 %v1688_v45, %v2328_v63 }
 0x1a1   : > { %v986_v62 = vpop.f32.mrf.mxu1 }
 0x1a2   : > { %v1000_v5 = vmul.f32 0.17677669, %v986_v62 }
 0x1a4   : > { %v1020_v13 = vmax.f32 %v996_v7, %v1000_v5 }
 0x1a9   : > { %v988_v0 = vpop.f32.mrf.mxu1 }
 0x1aa   : > { %v1001_v3 = vmul.f32 0.17677669, %v988_v0 }
 0x1ac   : > { %v1021_v11 = vmax.f32 %v997_v4, %v1001_v3 }
 0x1ae   : > { %v1024_v17 = vmax.f32 %v1020_v13, %v1021_v11  ;;  %v881_v11 = vadd.f32 %v1688_v45, %v880_v23 }
 0x1b1   : > { %v991_v1 = vpop.f32.mrf.mxu1 }
 0x1b2   : > { %v1002_v6 = vmul.f32 0.17677669, %v991_v1 }
 0x1b4   : > { %v1022_v14 = vmax.f32 %v998_v9, %v1002_v6 }
 0x1b9   : > { %v993_v8 = vpop.f32.mrf.mxu1 }
 0x1ba   : > { %v1003_v12 = vmul.f32 0.17677669, %v993_v8 }
 0x1bc   : > { %v1023_v15 = vmax.f32 %v999_v10, %v1003_v12 }
 0x1be   : > { %v1025_v18 = vmax.f32 %v1022_v14, %v1023_v15  ;;  %v883_v15 = vadd.f32 %v1688_v45, %v882_v31 }
 0x1c0   : > { %v1026_v19 = vmax.f32 %v1024_v17, %v1025_v18  ;;  %v887_v18 = vpop.f32.mrf.mxu0 }
 0x1c2   : > { %v1027_v20 = vrot.slane %v1026_v19, 4 }
 0x1c4   : > { %v1028_v21 = vmax.f32 %v1026_v19, %v1027_v20 }
 0x1c6   : > { %v1029_v22 = vrot.slane %v1028_v21, 2 }
 0x1c8   : > { %v1030_v24 = vmax.f32 %v1028_v21, %v1029_v22  ;;  %v886_v21 = vadd.f32 %v1688_v45, %v885_v54 }
 0x1ca   : > { %v1031_v25 = vrot.slane %v1030_v24, 1 }
 0x1cc   : > { %v1032_v27 = vmax.f32 %v1030_v24, %v1031_v25 }
 0x1ce   : > { %v1033_v28 = vmax.f32 %v1032_v27, %v1019_v26  ;;  %v888_v27 = vadd.f32 %v1688_v45, %v887_v18 }
 0x1d0   : > { %v1034_v29 = vperm.slane %v1033_v28, 0  ;;  %v1059_v30 = vsub.f32 %v1019_v26, %v1033_v28  ;;  %v1560_v28 = vld [vmem:[#allocation14 + $0x10] sm:$0xff] }
 0x1d2   : > { %v1060_v32 = vmul.f32 1.442695, %v1059_v30  ;;  %v1035_v33 = vsub.f32 %v996_v7, %v1034_v29  ;;  %v1036_v34 = vsub.f32 %v997_v4, %v1034_v29  ;;  %v1037_v35 = vsub.f32 %v998_v9, %v1034_v29 }
 0x1d3   : > { %v1038_v36 = vsub.f32 %v999_v10, %v1034_v29  ;;  %v1039_v39 = vsub.f32 %v1000_v5, %v1034_v29  ;;  %v1040_v43 = vsub.f32 %v1001_v3, %v1034_v29  ;;  %v1041_v48 = vsub.f32 %v1002_v6, %v1034_v29 }
 0x1d4   : > { %1689 = vpow2.f32 %v1060_v32  ;;  %v1043_v37 = vmul.f32 1.442695, %v1035_v33  ;;  %v1045_v38 = vmul.f32 1.442695, %v1036_v34  ;;  %v1047_v40 = vmul.f32 1.442695, %v1037_v35 }
 0x1d5   : > { %v1049_v42 = vmul.f32 1.442695, %v1038_v36  ;;  %v1051_v46 = vmul.f32 1.442695, %v1039_v39  ;;  %v1042_v52 = vsub.f32 %v1003_v12, %v1034_v29  ;;  %v1053_v53 = vmul.f32 1.442695, %v1040_v43 }
 0x1d6   : > { %1691 = vpow2.f32 %v1043_v37  ;;  %v1055_v57 = vmul.f32 1.442695, %v1041_v48  ;;  %v876_v3 = vadd.f32 %v1688_v45, %v2330_v2  ;;  %v878_v7 = vadd.f32 %v1688_v45, %v877_v16  ;;  %v1561_v2 = vld [vmem:[#allocation14 + $0x18] sm:$0xff]  ;;  %v1559_v35 = vld [vmem:[#allocation14 + $0x8] sm:$0xff] }
 0x1d7   : > { %1693 = vpow2.f32 %v1045_v38  ;;  %v1057_v62 = vmul.f32 1.442695, %v1042_v52  ;;  %1185 = vmatpush.bf16.msra.mxu2 %v1561_v2 }
 0x1d8   : > { %1695 = vpow2.f32 %v1047_v40  ;;  %v1558_v40 = vld [vmem:[#allocation14] sm:$0xff] }
 0x1d9   : > { %1697 = vpow2.f32 %v1049_v42 }
 0x1da   : > { %v2339_v51 = vpop.eup %1689  ;;  %1699 = vpow2.f32 %v1051_v46 }
 0x1db   : > { %v2342_v55 = vmul.f32 %v2339_v51, %v819_v50  ;;  %1701 = vpow2.f32 %v1053_v53  ;;  %1186 = vmatpush.bf16.msra.mxu2 %v1560_v28 }
 0x1dc   : > { %v1692_v59 = vpop.eup %1691  ;;  %1703 = vpow2.f32 %v1055_v57 }
 0x1dd   : > { %v1694_v47 = vpop.eup %1693  ;;  %v1091_v0 = vmul.f32 %v1692_v59, %v871_v56  ;;  %1705 = vpow2.f32 %v1057_v62 }
 0x1de   : > { %v1696_v1 = vpop.eup %1695  ;;  %v1062_v4 = vadd.f32 %v1694_v47, %v1692_v59  ;;  %v1092_v5 = vmul.f32 %v1694_v47, %v873_v60 }
 0x1df   : > { %v1698_v6 = vpop.eup %1697  ;;  %v1093_v9 = vmul.f32 %v1696_v1, %v876_v3  ;;  %1187 = vmatpush.bf16.msra.mxu2 %v1559_v35 }
 0x1e0   : > { %v1063_v8 = vadd.f32 %v1696_v1, %v1062_v4  ;;  %v1099_v10 = vadd.f32 %v1092_v5, %v1091_v0  ;;  %v1700_v12 = vpop.eup %1699  ;;  %v1094_v13 = vmul.f32 %v1698_v6, %v878_v7 }
 0x1e1   : > { %v1702_v17 = vpop.eup %1701  ;;  %v1095_v16 = vmul.f32 %v1700_v12, %v881_v11 }
 0x1e2   : > { %v1064_v63 = vadd.f32 %v1698_v6, %v1063_v8  ;;  %v1100_v14 = vadd.f32 %v1099_v10, %v1093_v9  ;;  %v1704_v22 = vpop.eup %1703  ;;  %v1096_v26 = vmul.f32 %v1702_v17, %v883_v15 }
 0x1e3   : > { %v1706_v23 = vpop.eup %1705  ;;  %v1097_v32 = vmul.f32 %v1704_v22, %v886_v21  ;;  %1188 = vmatpush.bf16.msra.mxu2 %v1558_v40 }
 0x1e4   : > { %v1101_v19 = vadd.f32 %v1100_v14, %v1094_v13  ;;  %v1065_v20 = vadd.f32 %v1700_v12, %v1064_v63  ;;  %v1098_v34 = vmul.f32 %v1706_v23, %v888_v27 }
 0x1e6   : > { %v1102_v24 = vadd.f32 %v1101_v19, %v1095_v16  ;;  %v1066_v25 = vadd.f32 %v1702_v17, %v1065_v20 }
 0x1e8   : > { %v1103_v29 = vadd.f32 %v1102_v24, %v1096_v26  ;;  %v1067_v30 = vadd.f32 %v1704_v22, %v1066_v25 }
 0x1ea   : > { %v1068_v31 = vadd.f32 %v1706_v23, %v1067_v30  ;;  %v1104_v33 = vadd.f32 %v1103_v29, %v1097_v32 }
 0x1ec   : > { %v1069_v36 = vrot.slane %v1068_v31, 4  ;;  %v1105_v37 = vadd.f32 %v1104_v33, %v1098_v34 }
 0x1ee   : > { %v1070_v38 = vadd.f32 %v1069_v36, %v1068_v31  ;;  %v1106_v39 = vrot.slane %v1105_v37, 4 }
 0x1f0   : > { %v1071_v41 = vrot.slane %v1070_v38, 2  ;;  %v1107_v42 = vadd.f32 %v1106_v39, %v1105_v37 }
 0x1f2   : > { %v1072_v43 = vadd.f32 %v1071_v41, %v1070_v38  ;;  %v1108_v44 = vrot.slane %v1107_v42, 2 }
 0x1f4   : > { %v1073_v45 = vrot.slane %v1072_v43, 1  ;;  %v1109_v46 = vadd.f32 %v1108_v44, %v1107_v42 }
 0x1f6   : > { %v1074_v48 = vadd.f32 %v1073_v45, %v1072_v43  ;;  %v1110_v49 = vrot.slane %v1109_v46, 1 }
 0x1f8   : > { %v1111_v50 = vadd.f32 %v1110_v49, %v1109_v46  ;;  %v1075_v52 = vadd.f32 %v2339_v51, %v1074_v48 }
 0x1fa   : > { %1707 = vrcp.f32 %v1075_v52  ;;  %v1113_v53 = vadd.f32 %v2342_v55, %v1111_v50  ;;  %v1087_v58 = vand.u32 2147483648, %v1075_v52  ;;  %v1085_v60 = vand.u32 2147483647, %v1075_v52  ;;  %v1132_v55 = vld [vmem:[%s2397_s11] sm:$0x1] }
 0x1fb   : > { %vm1081_vm1 = vweird.f32 %v1075_v52 }
 0x1fc   : > { %v1088_v62 = vor.u32 1.1754944e-38, %v1087_v58  ;;  %vm1086_vm3 = vcmp.eq.f32.partialorder %v1085_v60, 8.507059e+37 }
 0x200   : > { %v1708_v54 = vpop.eup %1707 }
 0x201   : > { %v1077_v56 = vmul.f32 %v1708_v54, %v1075_v52  ;;  %vm1082_vm0 = vweird.f32 %v1708_v54 }
 0x202   : > { %vm1083_vm2 = vmor %vm1081_vm1, %vm1082_vm0 }
 0x203   : > { %v1078_v57 = vsub.f32 1.0, %v1077_v56 }
 0x205   : > { %v1079_v59 = vmul.f32 %v1708_v54, %v1078_v57 }
 0x207   : > { %v1080_v47 = vadd.f32 %v1708_v54, %v1079_v59 }
 0x209   : > { %v1084_v0 = vsel %vm1083_vm2, %v1708_v54, %v1080_v47 }
 0x20a   : > { %v1089_v51 = vsel %vm1086_vm3, %v1088_v62, %v1084_v0 }
 0x20b   : > { %v1114_v1 = vmul.f32 %v1113_v53, %v1089_v51 }
 0x20d   : > { %v1131_v3 = vpack.c.bf16 %v1114_v1, %v1114_v1 }
 0x20f   : > { %1189 = vmatmul.bf16.vlgmr.msra.gmra.mxu2 %v1131_v3 }
 0x292   : > { %v1190_v4 = vpop.f32.mrf.mxu2 }
 0x293   : > { %v1191_v5 = vadd.f32 %v1190_v4, %v1132_v55 }
 0x295   : > { %1194 = vst [vmem:[%s546_s29] sm:$0x1] %v1191_v5 }
 0x296   : > { %1976 = shalt.err (!%p1973_p9)
}
 0x297   : > { %1596 = dma.vmem_to_hbm [thread:$0]  (%p2223_p13), %s1207_s26, 16, %s1209_s17, %s1196_s3  }
 0x29a   : > { %v1192_v6 = vpop.f32.mrf.mxu2 }
 0x29b PF: > { %s1220_s18 = sand.u32 1, %s2019_s21   ;;  %p2424_p10 = scmp.ge.s32.totalorder %s2031_s24, 2 }
 0x29c   : > { %s1221_s7 = scalar_lea.sflag [#allocation4], %s1220_s18 }
 0x29d   : > { %p1625_p11 = pnand %p2424_p10, %p2228_p5 }
 0x29f   : > { %p1626_p0 = pneg %p1625_p11 }
 0x2a1   : > { %2014 = dma.done.wait (%p1626_p0), %s1221_s7, 16  }
 0x2a2   : > { %2016 = vsyncadd (%p1626_p0), %s1221_s7, 4294967280  ;;  %p29_p2 = scmp.ge.s32.totalorder %s2203_s13, 4   ;;  %s2425_s21 = smov %s2023_s22 }
 0x2a3   : > { %s2426_s22 = smov %s2027_s23  ;;  %s2427_s23 = smov %s2215_s20 }
 0x2a4   : > { %s2428_s24 = smov %s2203_s13  ;;  %31 = sbr.rel (!%p29_p2) target bundleno = 16 (0x10), region = 141 }
 0x2a9   :  { %1226 = vsyncpa [#allocation3], 1 }
 0x2aa   :  { %1228 = vsyncpa [#allocation3 + $0x1], 1 }
 0x2ab   :  { %1229 = vsyncpa [#allocation6], 1 }
 0x2ac   :  { %1230 = vsyncpa [#allocation9], 1 }
 0x2ad   :  { %1231 = vsyncpa [#allocation12], 1 }
 0x2ae   :  { %1232 = vsyncpa [#allocation15], 1 }
 0x2af   :  { %1233 = vsyncpa [#allocation4], 1 }
 0x2b0   :  { %1235 = vsyncpa [#allocation4 + $0x1], 1 }

</bundles_post_ra>
